<compile_context>
chip_gen: v7x
topology: tpu7x:2x2x1
jax: 0.10.0
libtpu: 0.0.40
codegen_flags: <defaults>
</compile_context>

<pallas_src>
import jax
import jax.numpy as jnp
from jax.experimental import pallas as pl
from jax.experimental.pallas import tpu as pltpu


def _round_up(a, m):
    return (a + m - 1) // m * m


def polrs_kernel(x_ref, y_ref, wbx_ref, bb_ref, wct_ref, bc_ref,
                 logits_ref, stats_ref):
    # x_ref   : (TB, K)    input dtype (f32 or bf16), K = C*H*W
    # y_ref   : (TB, 1)    i32 labels
    # wbx_ref : (K, F)     f32  HW-replicated, pre-scaled backbone weight
    #                      (folds GAP + linear projection into one MXU matmul)
    # bb_ref  : (1, F)     f32  backbone bias
    # wct_ref : (F, NCP)   f32  classifier weight, transposed + lane-padded
    # bc_ref  : (1, NCP)   f32  classifier bias; padded lanes hold -1e30
    # logits_ref : (TB, NCP) f32  lane-dense logits output
    # stats_ref  : (TB, 128) f32  col 0 = per-row CE loss, col 1 = correct flag
    x = x_ref[...].astype(jnp.float32)

    # --- backbone: fused GAP + projection, single MXU matmul (large K) -------
    feats = jnp.dot(x, wbx_ref[...],
                    preferred_element_type=jnp.float32) + bb_ref[...]   # (TB, F)

    # --- classifier head (pre-transposed weight, no in-kernel relayout) ------
    logits = jnp.dot(feats, wct_ref[...],
                     preferred_element_type=jnp.float32) + bc_ref[...]  # (TB, NCP)
    logits_ref[...] = logits

    ncp = logits.shape[1]
    y = y_ref[...]                                                      # (TB, 1)

    # --- eval branch: argmax(dim=1) == y  (first-max tie-break, like torch) --
    maxv = jnp.max(logits, axis=1, keepdims=True)                       # (TB, 1)
    cls_iota = jax.lax.broadcasted_iota(jnp.int32, logits.shape, 1)
    pred = jnp.min(jnp.where(logits == maxv, cls_iota, ncp),
                   axis=1, keepdims=True)                               # (TB, 1)
    correct = (pred == y).astype(jnp.float32)                           # (TB, 1)

    # --- training branch: per-row CrossEntropy (mean taken outside) ----------
    shifted = logits - maxv                    # padded lanes ~ -1e30 -> exp==0
    lse = maxv + jnp.log(jnp.sum(jnp.exp(shifted), axis=1, keepdims=True))
    picked = jnp.sum(jnp.where(cls_iota == y, logits, 0.0),
                     axis=1, keepdims=True)
    row_loss = lse - picked                                             # (TB, 1)

    # Lane-dense stats slab: unmasked vector stores.
    col = jax.lax.broadcasted_iota(jnp.int32, stats_ref.shape, 1)
    stats_ref[...] = jnp.where(col == 0, row_loss,
                               jnp.where(col == 1, correct, 0.0))


def polrs_forward(x, y, wb, bb, wc, bc, *, batch_tile=128):
    """Fused POLRS forward.

    Returns (logits (B, NC) f32, correct (B,) bool, loss () f32)."""
    B, C, H, W = x.shape
    Fdim = wb.shape[0]
    NC = wc.shape[0]
    HW = H * W
    K = C * HW

    # Batch tiling: sublane-aligned tile, pad B up to a multiple of it.
    TB = min(batch_tile, _round_up(B, 8))
    B_pad = _round_up(B, TB)
    # Lane-pad the class dim so logits / stats stores are lane-dense.
    NCP = _round_up(max(NC, 128), 128)

    # ---- wrapper-side layout plumbing (free XLA ops, done once) -------------
    # x stays in its input dtype (bf16 inputs stream at half the HBM bytes and
    # are cast to f32 inside the kernel before MXU/VPU math).
    x_flat = x.reshape(B, K)
    y_i = y.astype(jnp.int32)
    if B_pad != B:
        x_flat = jnp.pad(x_flat, ((0, B_pad - B), (0, 0)))
        y_i = jnp.pad(y_i, (0, B_pad - B))
    y2 = y_i.reshape(B_pad, 1)

    # Fold GAP into the projection: wbx[c*HW + s, f] = wb[f, c] / HW.
    wbx = (jnp.repeat(wb.astype(jnp.float32).T, HW, axis=0) / HW)       # (K, F)
    bb2 = bb.reshape(1, Fdim).astype(jnp.float32)
    # Classifier weight transposed + lane-padded; padded bias lanes get -1e30
    # so they never win the argmax and contribute 0 to the softmax denominator.
    wct = jnp.pad(wc.astype(jnp.float32).T, ((0, 0), (0, NCP - NC)))    # (F, NCP)
    bc_pad = jnp.concatenate(
        [bc.astype(jnp.float32), jnp.full((NCP - NC,), -1e30, jnp.float32)]
    ).reshape(1, NCP)

    grid = (B_pad // TB,)

    out_shapes = (
        jax.ShapeDtypeStruct((B_pad, NCP), jnp.float32),   # lane-dense logits
        jax.ShapeDtypeStruct((B_pad, 128), jnp.float32),   # per-row loss / correct
    )

    logits_pad, stats = pl.pallas_call(
        polrs_kernel,
        out_shape=out_shapes,
        grid=grid,
        in_specs=[
            pl.BlockSpec((TB, K), lambda i: (i, 0)),        # x: tiled, pipelined
            pl.BlockSpec((TB, 1), lambda i: (i, 0)),        # y
            pl.BlockSpec((K, Fdim), lambda i: (0, 0)),      # weights: constant
            pl.BlockSpec((1, Fdim), lambda i: (0, 0)),      #   block index ->
            pl.BlockSpec((Fdim, NCP), lambda i: (0, 0)),    #   fetched once,
            pl.BlockSpec((1, NCP), lambda i: (0, 0)),       #   stay resident
        ],
        out_specs=[
            pl.BlockSpec((TB, NCP), lambda i: (i, 0)),
            pl.BlockSpec((TB, 128), lambda i: (i, 0)),
        ],
        compiler_params=pltpu.CompilerParams(
            # Batch tiles are independent (loss is a per-row partial reduced
            # outside), so the axis is megacore-parallel on v7x and a no-op
            # on v5e/v6e.
            dimension_semantics=("parallel",)),
    )(x_flat, y2, wbx, bb2, wct, bc_pad)

    logits = logits_pad[:B, :NC]
    correct = stats[:B, 1] > 0.5
    loss = jnp.mean(stats[:B, 0])          # mean over the real batch rows only
    return logits, correct, loss


def _reference(x, y, wb, bb, wc, bc):
    B, C, H, W = x.shape
    gap = jnp.mean(x.reshape(B, C, H * W), axis=-1)
    feats = gap @ wb.T + bb
    logits = feats @ wc.T + bc
    pred = jnp.argmax(logits, axis=1)
    correct = pred == y
    lse = jax.nn.logsumexp(logits, axis=1)
    picked = jnp.take_along_axis(logits, y[:, None], axis=1)[:, 0]
    loss = jnp.mean(lse - picked)
    return logits, correct, loss


if __name__ == "__main__":
    # Small shapes consistent with the module's forward:
    #   x: (batch, channels, H, W) NCHW image batch
    #   num_features = 32, num_classes = 4
    B, C, H, W = 2, 4, 16, 16
    NUM_FEATURES = 32
    NUM_CLASSES = 4

    key = jax.random.PRNGKey(0)
    kx, ky, kwb, kbb, kwc, kbc = jax.random.split(key, 6)

    x = jax.random.normal(kx, (B, C, H, W), dtype=jnp.float32)
    y = jax.random.randint(ky, (B,), 0, NUM_CLASSES, dtype=jnp.int32)

    # Deterministic parameter init (synthetic; PyTorch nn.Linear shapes).
    wb = 0.1 * jax.random.normal(kwb, (NUM_FEATURES, C), dtype=jnp.float32)
    bb = 0.1 * jax.random.normal(kbb, (NUM_FEATURES,), dtype=jnp.float32)
    wc = 0.1 * jax.random.normal(kwc, (NUM_CLASSES, NUM_FEATURES), dtype=jnp.float32)
    bc = 0.1 * jax.random.normal(kbc, (NUM_CLASSES,), dtype=jnp.float32)

    logits, correct, loss = polrs_forward(x, y, wb, bb, wc, bc)
    jax.block_until_ready((logits, correct, loss))

    # Sanity check against a plain-JAX reference (tolerance accounts for the
    # MXU-fused GAP summation order vs. mean-then-matmul in the reference).
    ref_logits, ref_correct, ref_loss = _reference(x, y, wb, bb, wc, bc)
    assert jnp.allclose(logits, ref_logits, atol=1e-3, rtol=1e-3)
    assert bool(jnp.all(correct == ref_correct))
    assert jnp.allclose(loss, ref_loss, atol=1e-3, rtol=1e-3)

    print("KERNEL_OK")
</pallas_src>

<mosaic_0001>
module attributes {stable_mosaic.version = 11 : i64} {
  func.func @polrs_kernel(%arg0: i32, %arg1: memref<8x1024xf32, #tpu.memory_space<vmem>>, %arg2: memref<8x1xi32, #tpu.memory_space<vmem>>, %arg3: memref<1024x32xf32, #tpu.memory_space<vmem>>, %arg4: memref<1x32xf32, #tpu.memory_space<vmem>>, %arg5: memref<32x128xf32, #tpu.memory_space<vmem>>, %arg6: memref<1x128xf32, #tpu.memory_space<vmem>>, %arg7: memref<8x128xf32, #tpu.memory_space<vmem>>, %arg8: memref<8x128xf32, #tpu.memory_space<vmem>>) attributes {dimension_semantics = [#tpu.dimension_semantics<parallel>], iteration_bounds = array<i64: 1>, scalar_prefetch = 0 : i64, scratch_operands = 0 : i64, tpu.core_type = #tpu.core_type<tc>, window_params = [{transform_indices = @transform_0, window_bounds = array<i64: 8, 1024>}, {transform_indices = @transform_1, window_bounds = array<i64: 8, 1>}, {pipeline_mode = #tpu.pipeline_mode<synchronous>, transform_indices = @transform_2, window_bounds = array<i64: 1024, 32>}, {pipeline_mode = #tpu.pipeline_mode<synchronous>, transform_indices = @transform_3, window_bounds = array<i64: 1, 32>}, {pipeline_mode = #tpu.pipeline_mode<synchronous>, transform_indices = @transform_4, window_bounds = array<i64: 32, 128>}, {pipeline_mode = #tpu.pipeline_mode<synchronous>, transform_indices = @transform_5, window_bounds = array<i64: 1, 128>}, {transform_indices = @transform_6, window_bounds = array<i64: 8, 128>}, {transform_indices = @transform_7, window_bounds = array<i64: 8, 128>}]} {
    %c0 = arith.constant 0 : index
    %c0_0 = arith.constant 0 : index
    %0 = vector.load %arg1[%c0, %c0_0] : memref<8x1024xf32, #tpu.memory_space<vmem>>, vector<8x1024xf32>
    %c0_1 = arith.constant 0 : index
    %c0_2 = arith.constant 0 : index
    %1 = vector.load %arg3[%c0_1, %c0_2] : memref<1024x32xf32, #tpu.memory_space<vmem>>, vector<1024x32xf32>
    %cst = arith.constant dense<0.000000e+00> : vector<8x32xf32>
    %2 = tpu.matmul %0, %1, %cst {dimension_numbers = #tpu.dot_dimension_numbers<[1], [0], [0], [1], [0, 0, 1, 1], [], []>} : vector<8x1024xf32>, vector<1024x32xf32>, vector<8x32xf32> -> vector<8x32xf32>
    %c0_3 = arith.constant 0 : index
    %c0_4 = arith.constant 0 : index
    %3 = vector.load %arg4[%c0_3, %c0_4] : memref<1x32xf32, #tpu.memory_space<vmem>>, vector<1x32xf32>
    %4 = vector.broadcast %3 : vector<1x32xf32> to vector<8x32xf32>
    %5 = arith.addf %2, %4 : vector<8x32xf32>
    %c0_5 = arith.constant 0 : index
    %c0_6 = arith.constant 0 : index
    %6 = vector.load %arg5[%c0_5, %c0_6] : memref<32x128xf32, #tpu.memory_space<vmem>>, vector<32x128xf32>
    %cst_7 = arith.constant dense<0.000000e+00> : vector<8x128xf32>
    %7 = tpu.matmul %5, %6, %cst_7 {dimension_numbers = #tpu.dot_dimension_numbers<[1], [0], [0], [1], [0, 0, 1, 1], [], []>} : vector<8x32xf32>, vector<32x128xf32>, vector<8x128xf32> -> vector<8x128xf32>
    %c0_8 = arith.constant 0 : index
    %c0_9 = arith.constant 0 : index
    %8 = vector.load %arg6[%c0_8, %c0_9] : memref<1x128xf32, #tpu.memory_space<vmem>>, vector<1x128xf32>
    %9 = vector.broadcast %8 : vector<1x128xf32> to vector<8x128xf32>
    %10 = arith.addf %7, %9 : vector<8x128xf32>
    %c0_10 = arith.constant 0 : index
    %c0_11 = arith.constant 0 : index
    %11 = vector.load %arg7[%c0_10, %c0_11] : memref<8x128xf32, #tpu.memory_space<vmem>>, vector<8x128xf32>
    tpu.vector_store %arg7[%c0_10, %c0_11], %10 {strides = array<i32>} : memref<8x128xf32, #tpu.memory_space<vmem>>, vector<8x128xf32>,
    %c0_12 = arith.constant 0 : index
    %c0_13 = arith.constant 0 : index
    %12 = vector.load %arg2[%c0_12, %c0_13] : memref<8x1xi32, #tpu.memory_space<vmem>>, vector<8x1xi32>
    %cst_14 = arith.constant dense<0xFF800000> : vector<8xf32>
    %13 = vector.multi_reduction <maximumf>, %10, %cst_14 [1] : vector<8x128xf32> to vector<8xf32>
    %14 = vector.shape_cast %13 : vector<8xf32> to vector<8x1xf32>
    %15 = tpu.iota {dimensions = array<i32: 1>} : vector<8x128xi32>
    %16 = vector.broadcast %14 : vector<8x1xf32> to vector<8x128xf32>
    %17 = arith.cmpf oeq, %10, %16 : vector<8x128xf32>
    %c128_i32 = arith.constant 128 : i32
    %18 = vector.broadcast %c128_i32 : i32 to vector<8x128xi32>
    %19 = arith.select %17, %15, %18 : vector<8x128xi1>, vector<8x128xi32>
    %cst_15 = arith.constant dense<2147483647> : vector<8xi32>
    %20 = vector.multi_reduction <minsi>, %19, %cst_15 [1] : vector<8x128xi32> to vector<8xi32>
    %21 = vector.shape_cast %20 : vector<8xi32> to vector<8x1xi32>
    %22 = arith.cmpi eq, %21, %12 : vector<8x1xi32>
    %23 = arith.extui %22 : vector<8x1xi1> to vector<8x1xi32>
    %24 = arith.sitofp %23 : vector<8x1xi32> to vector<8x1xf32>
    %25 = vector.broadcast %14 : vector<8x1xf32> to vector<8x128xf32>
    %26 = arith.subf %10, %25 : vector<8x128xf32>
    %27 = math.exp %26 : vector<8x128xf32>
    %cst_16 = arith.constant dense<0.000000e+00> : vector<8xf32>
    %28 = vector.multi_reduction <add>, %27, %cst_16 [1] : vector<8x128xf32> to vector<8xf32>
    %29 = vector.shape_cast %28 : vector<8xf32> to vector<8x1xf32>
    %30 = math.log %29 : vector<8x1xf32>
    %31 = arith.addf %14, %30 : vector<8x1xf32>
    %32 = vector.broadcast %12 : vector<8x1xi32> to vector<8x128xi32>
    %33 = arith.cmpi eq, %15, %32 : vector<8x128xi32>
    %cst_17 = arith.constant 0.000000e+00 : f32
    %34 = vector.broadcast %cst_17 : f32 to vector<8x128xf32>
    %35 = arith.select %33, %10, %34 : vector<8x128xi1>, vector<8x128xf32>
    %cst_18 = arith.constant dense<0.000000e+00> : vector<8xf32>
    %36 = vector.multi_reduction <add>, %35, %cst_18 [1] : vector<8x128xf32> to vector<8xf32>
    %37 = vector.shape_cast %36 : vector<8xf32> to vector<8x1xf32>
    %38 = arith.subf %31, %37 : vector<8x1xf32>
    %39 = tpu.iota {dimensions = array<i32: 1>} : vector<8x128xi32>
    %c0_i32 = arith.constant 0 : i32
    %40 = vector.broadcast %c0_i32 : i32 to vector<8x128xi32>
    %41 = arith.cmpi eq, %39, %40 : vector<8x128xi32>
    %c1_i32 = arith.constant 1 : i32
    %42 = vector.broadcast %c1_i32 : i32 to vector<8x128xi32>
    %43 = arith.cmpi eq, %39, %42 : vector<8x128xi32>
    %cst_19 = arith.constant 0.000000e+00 : f32
    %44 = vector.shape_cast %24 : vector<8x1xf32> to vector<8x1xf32>
    %45 = vector.broadcast %44 : vector<8x1xf32> to vector<8x128xf32>
    %46 = vector.broadcast %cst_19 : f32 to vector<8x128xf32>
    %47 = arith.select %43, %45, %46 : vector<8x128xi1>, vector<8x128xf32>
    %48 = vector.shape_cast %38 : vector<8x1xf32> to vector<8x1xf32>
    %49 = vector.broadcast %48 : vector<8x1xf32> to vector<8x128xf32>
    %50 = arith.select %41, %49, %47 : vector<8x128xi1>, vector<8x128xf32>
    %c0_20 = arith.constant 0 : index
    %c0_21 = arith.constant 0 : index
    %51 = vector.load %arg8[%c0_20, %c0_21] : memref<8x128xf32, #tpu.memory_space<vmem>>, vector<8x128xf32>
    tpu.vector_store %arg8[%c0_20, %c0_21], %50 {strides = array<i32>} : memref<8x128xf32, #tpu.memory_space<vmem>>, vector<8x128xf32>,
    return
  }
  func.func @transform_0(%arg0: i32) -> (i32, i32) {
    %c0_i32 = arith.constant 0 : i32
    %c0_i32_0 = arith.constant 0 : i32
    return %arg0, %c0_i32 : i32, i32
  }
  func.func @transform_1(%arg0: i32) -> (i32, i32) {
    %c0_i32 = arith.constant 0 : i32
    %c0_i32_0 = arith.constant 0 : i32
    return %arg0, %c0_i32 : i32, i32
  }
  func.func @transform_2(%arg0: i32) -> (i32, i32) {
    %c0_i32 = arith.constant 0 : i32
    %c0_i32_0 = arith.constant 0 : i32
    %c0_i32_1 = arith.constant 0 : i32
    return %c0_i32, %c0_i32_0 : i32, i32
  }
  func.func @transform_3(%arg0: i32) -> (i32, i32) {
    %c0_i32 = arith.constant 0 : i32
    %c0_i32_0 = arith.constant 0 : i32
    %c0_i32_1 = arith.constant 0 : i32
    return %c0_i32, %c0_i32_0 : i32, i32
  }
  func.func @transform_4(%arg0: i32) -> (i32, i32) {
    %c0_i32 = arith.constant 0 : i32
    %c0_i32_0 = arith.constant 0 : i32
    %c0_i32_1 = arith.constant 0 : i32
    return %c0_i32, %c0_i32_0 : i32, i32
  }
  func.func @transform_5(%arg0: i32) -> (i32, i32) {
    %c0_i32 = arith.constant 0 : i32
    %c0_i32_0 = arith.constant 0 : i32
    %c0_i32_1 = arith.constant 0 : i32
    return %c0_i32, %c0_i32_0 : i32, i32
  }
  func.func @transform_6(%arg0: i32) -> (i32, i32) {
    %c0_i32 = arith.constant 0 : i32
    %c0_i32_0 = arith.constant 0 : i32
    return %arg0, %c0_i32 : i32, i32
  }
  func.func @transform_7(%arg0: i32) -> (i32, i32) {
    %c0_i32 = arith.constant 0 : i32
    %c0_i32_0 = arith.constant 0 : i32
    return %arg0, %c0_i32 : i32, i32
  }
}

</mosaic_0001>

<bundles_post_ra>
// kernel: tpu_custom_call.1
= control target key start
LH: loop header
LB: loop body
LE: loop exit
PB: predicated region body
PF: predicated region fallthrough
CT: control target
= control target key end

     0   :  { %13 = vsyncpa [#allocation3], 0  ;;  %s1473_s0 = inlined_call_operand.vmem [shape: f32[8,1024], index: 0, kind: input, shape index: {}]   ;;  %s1474_s1 = inlined_call_operand.vmem [shape: s32[8,1], index: 1, kind: input, shape index: {}]   ;;  %s1475_s2 = inlined_call_operand.vmem [shape: f32[1024,32], index: 2, kind: input, shape index: {}]   ;;  %s1476_s3 = inlined_call_operand.vmem [shape: f32[1,32], index: 3, kind: input, shape index: {}]   ;;  %s1477_s4 = inlined_call_operand.vmem [shape: f32[32,128], index: 4, kind: input, shape index: {}]   ;;  %s1478_s5 = inlined_call_operand.vmem [shape: f32[1,128], index: 5, kind: input, shape index: {}]   ;;  %s1479_s6 = inlined_call_operand.hbm [shape: f32[8,128], index: 6, kind: output, shape index: {0}]   ;;  %s1480_s7 = inlined_call_operand.hbm [shape: f32[8,128], index: 7, kind: output, shape index: {1}]  }
   0x1   :  { %v51_v0 = vld [vmem:[%s1475_s2 + $0x80] sm:$0xff]  ;;  %v52_v1 = vld [vmem:[%s1475_s2 + $0x88] sm:$0xff]  ;;  %v53_v11 = vld [vmem:[%s1475_s2 + $0x90] sm:$0xff] }
   0x2   :  { %v35_v2 = vld [vmem:[%s1475_s2] sm:$0xff]  ;;  %v774_v3 = vpack.c.bf16 %v52_v1, %v51_v0  ;;  %v36_v4 = vld [vmem:[%s1475_s2 + $0x8] sm:$0xff]  ;;  %v54_v13 = vld [vmem:[%s1475_s2 + $0x98] sm:$0xff] }
   0x3   :  { %v83_v5 = vld [vmem:[%s1475_s2 + $0x180] sm:$0xff]  ;;  %v84_v6 = vld [vmem:[%s1475_s2 + $0x188] sm:$0xff]  ;;  %v776_v7 = vpack.c.bf16 %v36_v4, %v35_v2  ;;  %v37_v14 = vld [vmem:[%s1475_s2 + $0x10] sm:$0xff]  ;;  %v778_v16 = vpack.c.bf16 %v54_v13, %v53_v11 }
   0x4   :  { %v806_v8 = vpack.c.bf16 %v84_v6, %v83_v5  ;;  %v67_v9 = vld [vmem:[%s1475_s2 + $0x100] sm:$0xff]  ;;  %v68_v10 = vld [vmem:[%s1475_s2 + $0x108] sm:$0xff]  ;;  %775 = vmatprep.subr.bf16.mxu0 %v774_v3  ;;  %v38_v15 = vld [vmem:[%s1475_s2 + $0x18] sm:$0xff] }
   0x5   :  { %v808_v12 = vpack.c.bf16 %v68_v10, %v67_v9  ;;  %777 = vmatpush3.bf16.msra.mxu0 %v776_v7  ;;  %v780_v17 = vpack.c.bf16 %v38_v15, %v37_v14  ;;  %v85_v18 = vld [vmem:[%s1475_s2 + $0x190] sm:$0xff]  ;;  %v86_v19 = vld [vmem:[%s1475_s2 + $0x198] sm:$0xff]  ;;  %v55_v23 = vld [vmem:[%s1475_s2 + $0xa0] sm:$0xff] }
   0x6   :  { %807 = vmatprep.subr.bf16.mxu1 %v806_v8  ;;  %v69_v20 = vld [vmem:[%s1475_s2 + $0x110] sm:$0xff]  ;;  %v810_v21 = vpack.c.bf16 %v86_v19, %v85_v18  ;;  %v70_v22 = vld [vmem:[%s1475_s2 + $0x118] sm:$0xff]  ;;  %v56_v24 = vld [vmem:[%s1475_s2 + $0xa8] sm:$0xff]  ;;  %779 = vmatprep.subr.bf16.mxu0 %v778_v16 }
   0x7   :  { %809 = vmatpush3.bf16.msra.mxu1 %v808_v12  ;;  %v812_v25 = vpack.c.bf16 %v70_v22, %v69_v20  ;;  %v782_v26 = vpack.c.bf16 %v56_v24, %v55_v23  ;;  %v39_v27 = vld [vmem:[%s1475_s2 + $0x20] sm:$0xff]  ;;  %v40_v28 = vld [vmem:[%s1475_s2 + $0x28] sm:$0xff]  ;;  %v57_v35 = vld [vmem:[%s1475_s2 + $0xb0] sm:$0xff] }
   0x8   :  { %v87_v29 = vld [vmem:[%s1475_s2 + $0x1a0] sm:$0xff]  ;;  %811 = vmatprep.subr.bf16.mxu1 %v810_v21  ;;  %v88_v30 = vld [vmem:[%s1475_s2 + $0x1a8] sm:$0xff]  ;;  %v784_v33 = vpack.c.bf16 %v40_v28, %v39_v27  ;;  %v58_v36 = vld [vmem:[%s1475_s2 + $0xb8] sm:$0xff] }
   0x9   :  { %v71_v31 = vld [vmem:[%s1475_s2 + $0x120] sm:$0xff]  ;;  %v72_v32 = vld [vmem:[%s1475_s2 + $0x128] sm:$0xff]  ;;  %781 = vmatpush3.bf16.msra.mxu0 %v780_v17  ;;  %v814_v34 = vpack.c.bf16 %v88_v30, %v87_v29  ;;  %v41_v37 = vld [vmem:[%s1475_s2 + $0x30] sm:$0xff]  ;;  %v786_v39 = vpack.c.bf16 %v58_v36, %v57_v35 }
   0xa   :  { %783 = vmatprep.subr.bf16.mxu0 %v782_v26  ;;  %v816_v38 = vpack.c.bf16 %v72_v32, %v71_v31  ;;  %v42_v40 = vld [vmem:[%s1475_s2 + $0x38] sm:$0xff]  ;;  %v89_v41 = vld [vmem:[%s1475_s2 + $0x1b0] sm:$0xff]  ;;  %v59_v46 = vld [vmem:[%s1475_s2 + $0xc0] sm:$0xff] }
   0xb   :  { %813 = vmatpush3.bf16.msra.mxu1 %v812_v25  ;;  %v90_v42 = vld [vmem:[%s1475_s2 + $0x1b8] sm:$0xff]  ;;  %v73_v44 = vld [vmem:[%s1475_s2 + $0x130] sm:$0xff]  ;;  %v60_v47 = vld [vmem:[%s1475_s2 + $0xc8] sm:$0xff]  ;;  %v788_v48 = vpack.c.bf16 %v42_v40, %v41_v37 }
   0xc   :  { %815 = vmatprep.subr.bf16.mxu1 %v814_v34  ;;  %v818_v43 = vpack.c.bf16 %v90_v42, %v89_v41  ;;  %v74_v45 = vld [vmem:[%s1475_s2 + $0x138] sm:$0xff]  ;;  %v91_v49 = vld [vmem:[%s1475_s2 + $0x1c0] sm:$0xff]  ;;  %v92_v50 = vld [vmem:[%s1475_s2 + $0x1c8] sm:$0xff]  ;;  %v790_v52 = vpack.c.bf16 %v60_v47, %v59_v46 }
   0xd   :  { %785 = vmatpush3.bf16.msra.mxu0 %v784_v33  ;;  %v820_v51 = vpack.c.bf16 %v74_v45, %v73_v44  ;;  %v43_v53 = vld [vmem:[%s1475_s2 + $0x40] sm:$0xff]  ;;  %v44_v54 = vld [vmem:[%s1475_s2 + $0x48] sm:$0xff]  ;;  %v822_v56 = vpack.c.bf16 %v92_v50, %v91_v49  ;;  %v61_v58 = vld [vmem:[%s1475_s2 + $0xd0] sm:$0xff] }
   0xe   :  { %787 = vmatprep.subr.bf16.mxu0 %v786_v39  ;;  %v75_v55 = vld [vmem:[%s1475_s2 + $0x140] sm:$0xff]  ;;  %v76_v57 = vld [vmem:[%s1475_s2 + $0x148] sm:$0xff]  ;;  %v62_v59 = vld [vmem:[%s1475_s2 + $0xd8] sm:$0xff]  ;;  %v792_v62 = vpack.c.bf16 %v44_v54, %v43_v53 }
   0xf   :  { %817 = vmatpush3.bf16.msra.mxu1 %v816_v38  ;;  %v93_v60 = vld [vmem:[%s1475_s2 + $0x1d0] sm:$0xff]  ;;  %v94_v61 = vld [vmem:[%s1475_s2 + $0x1d8] sm:$0xff]  ;;  %v824_v63 = vpack.c.bf16 %v76_v57, %v75_v55  ;;  %v794_v0 = vpack.c.bf16 %v62_v59, %v61_v58  ;;  %v63_v6 = vld [vmem:[%s1475_s2 + $0xe0] sm:$0xff] }
  0x10   :  { %819 = vmatprep.subr.bf16.mxu1 %v818_v43  ;;  %v45_v1 = vld [vmem:[%s1475_s2 + $0x50] sm:$0xff]  ;;  %v46_v2 = vld [vmem:[%s1475_s2 + $0x58] sm:$0xff]  ;;  %v826_v4 = vpack.c.bf16 %v94_v61, %v93_v60  ;;  %v64_v7 = vld [vmem:[%s1475_s2 + $0xe8] sm:$0xff] }
  0x11   :  { %789 = vmatpush3.bf16.msra.mxu0 %v788_v48  ;;  %v77_v3 = vld [vmem:[%s1475_s2 + $0x150] sm:$0xff]  ;;  %v78_v5 = vld [vmem:[%s1475_s2 + $0x158] sm:$0xff]  ;;  %v95_v8 = vld [vmem:[%s1475_s2 + $0x1e0] sm:$0xff]  ;;  %v796_v10 = vpack.c.bf16 %v46_v2, %v45_v1  ;;  %v798_v14 = vpack.c.bf16 %v64_v7, %v63_v6 }
  0x12   :  { %791 = vmatprep.subr.bf16.mxu0 %v790_v52  ;;  %v96_v9 = vld [vmem:[%s1475_s2 + $0x1e8] sm:$0xff]  ;;  %v47_v11 = vld [vmem:[%s1475_s2 + $0x60] sm:$0xff]  ;;  %v828_v13 = vpack.c.bf16 %v78_v5, %v77_v3  ;;  %v65_v19 = vld [vmem:[%s1475_s2 + $0xf0] sm:$0xff] }
  0x13   :  { %821 = vmatpush3.bf16.msra.mxu1 %v820_v51  ;;  %v48_v12 = vld [vmem:[%s1475_s2 + $0x68] sm:$0xff]  ;;  %v79_v15 = vld [vmem:[%s1475_s2 + $0x160] sm:$0xff]  ;;  %v830_v18 = vpack.c.bf16 %v96_v9, %v95_v8  ;;  %v66_v20 = vld [vmem:[%s1475_s2 + $0xf8] sm:$0xff] }
  0x14   :  { %823 = vmatprep.subr.bf16.mxu1 %v822_v56  ;;  %v80_v16 = vld [vmem:[%s1475_s2 + $0x168] sm:$0xff]  ;;  %v30_v21 = vld [vmem:[%s1473_s0 + $0x18] sm:$0xff]  ;;  %v97_v22 = vld [vmem:[%s1475_s2 + $0x1f0] sm:$0xff]  ;;  %v800_v24 = vpack.c.bf16 %v48_v12, %v47_v11  ;;  %v802_v26 = vpack.c.bf16 %v66_v20, %v65_v19 }
  0x15   :  { %793 = vmatpush3.bf16.msra.mxu0 %v792_v62  ;;  %v28_v17 = vld [vmem:[%s1473_s0 + $0x8] sm:$0xff]  ;;  %v98_v23 = vld [vmem:[%s1475_s2 + $0x1f8] sm:$0xff]  ;;  %304 = vmatprep.mubr.f32.mxu1 %v30_v21  ;;  %v832_v25 = vpack.c.bf16 %v80_v16, %v79_v15  ;;  %v49_v27 = vld [vmem:[%s1475_s2 + $0x70] sm:$0xff] }
  0x16   :  { %795 = vmatprep.subr.bf16.mxu0 %v794_v0  ;;  %234 = vmatprep.mubr.f32.mxu0 %v28_v17  ;;  %v50_v28 = vld [vmem:[%s1475_s2 + $0x78] sm:$0xff]  ;;  %v81_v29 = vld [vmem:[%s1475_s2 + $0x170] sm:$0xff]  ;;  %v834_v30 = vpack.c.bf16 %v98_v23, %v97_v22  ;;  %v115_v32 = vld [vmem:[%s1475_s2 + $0x280] sm:$0xff] }
  0x17   :  { %825 = vmatpush3.bf16.msra.mxu1 %v824_v63  ;;  %v82_v31 = vld [vmem:[%s1475_s2 + $0x178] sm:$0xff]  ;;  %v116_v33 = vld [vmem:[%s1475_s2 + $0x288] sm:$0xff]  ;;  %v147_v34 = vld [vmem:[%s1475_s2 + $0x380] sm:$0xff]  ;;  %v804_v36 = vpack.c.bf16 %v50_v28, %v49_v27 }
  0x18   :  { %827 = vmatprep.subr.bf16.mxu1 %v826_v4  ;;  %v148_v35 = vld [vmem:[%s1475_s2 + $0x388] sm:$0xff]  ;;  %v836_v37 = vpack.c.bf16 %v82_v31, %v81_v29  ;;  %v838_v38 = vpack.c.bf16 %v116_v33, %v115_v32  ;;  %v99_v39 = vld [vmem:[%s1475_s2 + $0x200] sm:$0xff]  ;;  %v117_v44 = vld [vmem:[%s1475_s2 + $0x290] sm:$0xff] }
  0x19   :  { %797 = vmatpush3.bf16.msra.mxu0 %v796_v10  ;;  %v100_v40 = vld [vmem:[%s1475_s2 + $0x208] sm:$0xff]  ;;  %v131_v41 = vld [vmem:[%s1475_s2 + $0x300] sm:$0xff]  ;;  %v870_v42 = vpack.c.bf16 %v148_v35, %v147_v34  ;;  %v118_v45 = vld [vmem:[%s1475_s2 + $0x298] sm:$0xff] }
  0x1a   :  { %799 = vmatprep.subr.bf16.mxu0 %v798_v14  ;;  %v132_v43 = vld [vmem:[%s1475_s2 + $0x308] sm:$0xff]  ;;  %v149_v46 = vld [vmem:[%s1475_s2 + $0x390] sm:$0xff]  ;;  %v150_v47 = vld [vmem:[%s1475_s2 + $0x398] sm:$0xff]  ;;  %v840_v49 = vpack.c.bf16 %v100_v40, %v99_v39  ;;  %v842_v52 = vpack.c.bf16 %v118_v45, %v117_v44 }
  0x1b   :  { %829 = vmatpush3.bf16.msra.mxu1 %v828_v13  ;;  %v27_v48 = vld [vmem:[%s1473_s0] sm:$0xff]  ;;  %v29_v50 = vld [vmem:[%s1473_s0 + $0x10] sm:$0xff]  ;;  %v872_v51 = vpack.c.bf16 %v132_v43, %v131_v41  ;;  %v102_v54 = vld [vmem:[%s1475_s2 + $0x218] sm:$0xff]  ;;  %v874_v56 = vpack.c.bf16 %v150_v47, %v149_v46 }
  0x1c   :  { %831 = vmatprep.subr.bf16.mxu1 %v830_v18  ;;  %v101_v53 = vld [vmem:[%s1475_s2 + $0x210] sm:$0xff]  ;;  %v134_v57 = vld [vmem:[%s1475_s2 + $0x318] sm:$0xff]  ;;  %v119_v58 = vld [vmem:[%s1475_s2 + $0x2a0] sm:$0xff] }
  0x1d   :  { %801 = vmatpush3.bf16.msra.mxu0 %v800_v24  ;;  %v133_v55 = vld [vmem:[%s1475_s2 + $0x310] sm:$0xff]  ;;  %v120_v59 = vld [vmem:[%s1475_s2 + $0x2a8] sm:$0xff]  ;;  %v151_v60 = vld [vmem:[%s1475_s2 + $0x3a0] sm:$0xff]  ;;  %v844_v62 = vpack.c.bf16 %v102_v54, %v101_v53 }
  0x1e   :  { %803 = vmatprep.subr.bf16.mxu0 %v802_v26  ;;  %v152_v61 = vld [vmem:[%s1475_s2 + $0x3a8] sm:$0xff]  ;;  %v876_v63 = vpack.c.bf16 %v134_v57, %v133_v55  ;;  %v846_v0 = vpack.c.bf16 %v120_v59, %v119_v58  ;;  %v103_v1 = vld [vmem:[%s1475_s2 + $0x220] sm:$0xff]  ;;  %v121_v6 = vld [vmem:[%s1475_s2 + $0x2b0] sm:$0xff] }
  0x1f   :  { %833 = vmatpush3.bf16.msra.mxu1 %v832_v25  ;;  %v104_v2 = vld [vmem:[%s1475_s2 + $0x228] sm:$0xff]  ;;  %v135_v3 = vld [vmem:[%s1475_s2 + $0x320] sm:$0xff]  ;;  %v878_v4 = vpack.c.bf16 %v152_v61, %v151_v60  ;;  %v122_v7 = vld [vmem:[%s1475_s2 + $0x2b8] sm:$0xff] }
  0x20   :  { %835 = vmatprep.subr.bf16.mxu1 %v834_v30  ;;  %v136_v5 = vld [vmem:[%s1475_s2 + $0x328] sm:$0xff]  ;;  %v153_v8 = vld [vmem:[%s1475_s2 + $0x3b0] sm:$0xff]  ;;  %v154_v9 = vld [vmem:[%s1475_s2 + $0x3b8] sm:$0xff]  ;;  %v848_v10 = vpack.c.bf16 %v104_v2, %v103_v1  ;;  %v850_v12 = vpack.c.bf16 %v122_v7, %v121_v6 }
  0x21   :  { %805 = vmatpush3.bf16.msra.mxu0 %v804_v36  ;;  %v880_v11 = vpack.c.bf16 %v136_v5, %v135_v3  ;;  %v105_v13 = vld [vmem:[%s1475_s2 + $0x230] sm:$0xff]  ;;  %v106_v14 = vld [vmem:[%s1475_s2 + $0x238] sm:$0xff]  ;;  %v882_v16 = vpack.c.bf16 %v154_v9, %v153_v8  ;;  %v123_v18 = vld [vmem:[%s1475_s2 + $0x2c0] sm:$0xff] }
  0x22   :  { %839 = vmatprep.subr.bf16.mxu0 %v838_v38  ;;  %v137_v15 = vld [vmem:[%s1475_s2 + $0x330] sm:$0xff]  ;;  %v138_v17 = vld [vmem:[%s1475_s2 + $0x338] sm:$0xff]  ;;  %v124_v19 = vld [vmem:[%s1475_s2 + $0x2c8] sm:$0xff]  ;;  %v852_v22 = vpack.c.bf16 %v106_v14, %v105_v13 }
  0x23   :  { %837 = vmatpush3.bf16.msra.mxu1 %v836_v37  ;;  %v155_v20 = vld [vmem:[%s1475_s2 + $0x3c0] sm:$0xff]  ;;  %v156_v21 = vld [vmem:[%s1475_s2 + $0x3c8] sm:$0xff]  ;;  %v34_v25 = vld [vmem:[%s1473_s0 + $0x38] sm:$0xff]  ;;  %v884_v26 = vpack.c.bf16 %v138_v17, %v137_v15  ;;  %v854_v27 = vpack.c.bf16 %v124_v19, %v123_v18 }
  0x24   :  { %871 = vmatprep.subr.bf16.mxu1 %v870_v42  ;;  %235 = vmatmul.mubr.f32.vlgmr.msra.gmra.mrb[0].mxu0 %v27_v48  ;;  %v107_v23 = vld [vmem:[%s1475_s2 + $0x240] sm:$0xff]  ;;  %v32_v24 = vld [vmem:[%s1473_s0 + $0x28] sm:$0xff] }
  0x25   :  { %841 = vmatpush3.bf16.msra.mxu0 %v840_v49  ;;  %v108_v28 = vld [vmem:[%s1475_s2 + $0x248] sm:$0xff]  ;;  %v139_v29 = vld [vmem:[%s1475_s2 + $0x340] sm:$0xff] }
  0x26   :  { %305 = vmatmul.mubr.f32.vlgmr.msra.gmra.mrb[0].mxu1 %v29_v50  ;;  %843 = vmatprep.subr.bf16.mxu0 %v842_v52 }
  0x27   :  { %873 = vmatpush3.bf16.msra.mxu1 %v872_v51 }
  0x28   :  { %875 = vmatprep.subr.bf16.mxu1 %v874_v56 }
  0x29   :  { %845 = vmatpush3.bf16.msra.mxu0 %v844_v62 }
  0x2a   :  { %847 = vmatprep.subr.bf16.mxu0 %v846_v0 }
  0x2b   :  { %877 = vmatpush3.bf16.msra.mxu1 %v876_v63 }
  0x2c   :  { %879 = vmatprep.subr.bf16.mxu1 %v878_v4 }
  0x2d   :  { %849 = vmatpush3.bf16.msra.mxu0 %v848_v10 }
  0x2e   :  { %851 = vmatprep.subr.bf16.mxu0 %v850_v12 }
  0x2f   :  { %881 = vmatpush3.bf16.msra.mxu1 %v880_v11 }
  0x30   :  { %14 = vsyncpa [#allocation5], 0  ;;  %883 = vmatprep.subr.bf16.mxu1 %v882_v16  ;;  %v886_v30 = vpack.c.bf16 %v156_v21, %v155_v20  ;;  %v140_v31 = vld [vmem:[%s1475_s2 + $0x348] sm:$0xff]  ;;  %v125_v32 = vld [vmem:[%s1475_s2 + $0x2d0] sm:$0xff]  ;;  %374 = vmatprep.mubr.f32.mxu0 %v32_v24  ;;  %v856_v36 = vpack.c.bf16 %v108_v28, %v107_v23  ;;  %v968_v11 = vmov 0.0|0.0   ;;  %vm969_vm0 = vmmov 0  }
  0x31   :  { %v126_v33 = vld [vmem:[%s1475_s2 + $0x2d8] sm:$0xff]  ;;  %v157_v34 = vld [vmem:[%s1475_s2 + $0x3d0] sm:$0xff]  ;;  %444 = vmatprep.mubr.f32.mxu1 %v34_v25  ;;  %853 = vmatpush3.bf16.msra.mxu0 %v852_v22  ;;  %v888_v37 = vpack.c.bf16 %v140_v31, %v139_v29  ;;  %v127_v44 = vld [vmem:[%s1475_s2 + $0x2e0] sm:$0xff]  ;;  %v970_v15 = vmov 0.0   ;;  %vm461_vm1 = vcmask 261120   ;;  %s972_s29 = smov [#allocation2]  }
  0x32   :  { %v158_v35 = vld [vmem:[%s1475_s2 + $0x3d8] sm:$0xff]  ;;  %855 = vmatprep.subr.bf16.mxu0 %v854_v27  ;;  %v858_v38 = vpack.c.bf16 %v126_v33, %v125_v32  ;;  %v109_v39 = vld [vmem:[%s1475_s2 + $0x250] sm:$0xff]  ;;  %v128_v45 = vld [vmem:[%s1475_s2 + $0x2e8] sm:$0xff]  ;;  %s592_s30 = sshll.u32 %s972_s29, 4  ;;  %s593_s30 = int_to_ptr.vmem [resolvable:$true] %s592_s30 }
  0x33   :  { %885 = vmatpush3.bf16.msra.mxu1 %v884_v26  ;;  %v110_v40 = vld [vmem:[%s1475_s2 + $0x258] sm:$0xff]  ;;  %v141_v41 = vld [vmem:[%s1475_s2 + $0x350] sm:$0xff]  ;;  %v890_v42 = vpack.c.bf16 %v158_v35, %v157_v34  ;;  %v159_v46 = vld [vmem:[%s1475_s2 + $0x3e0] sm:$0xff]  ;;  %v862_v50 = vpack.c.bf16 %v128_v45, %v127_v44  ;;  %s920_s8 = scalar_lea.vmem %s593_s30, 128  ;;  %p925_p1 = scmp.lt.s32.totalorder %s593_s30, %s593_s30 }
  0x34   :  { %887 = vmatprep.subr.bf16.mxu1 %v886_v30  ;;  %v142_v43 = vld [vmem:[%s1475_s2 + $0x358] sm:$0xff]  ;;  %v160_v47 = vld [vmem:[%s1475_s2 + $0x3e8] sm:$0xff]  ;;  %v860_v48 = vpack.c.bf16 %v110_v40, %v109_v39  ;;  %v111_v51 = vld [vmem:[%s1475_s2 + $0x260] sm:$0xff]  ;;  %p921_p0 = scmp.ne.s32.totalorder %s593_s30, %s920_s8  ;;  %p926_p2 = scmp.lt.s32.totalorder %s920_s8, %s920_s8 }
  0x35   :  { %857 = vmatpush3.bf16.msra.mxu0 %v856_v36  ;;  %v892_v49 = vpack.c.bf16 %v142_v43, %v141_v41  ;;  %v112_v52 = vld [vmem:[%s1475_s2 + $0x268] sm:$0xff]  ;;  %v143_v53 = vld [vmem:[%s1475_s2 + $0x360] sm:$0xff]  ;;  %v894_v54 = vpack.c.bf16 %v160_v47, %v159_v46  ;;  %v129_v56 = vld [vmem:[%s1475_s2 + $0x2f0] sm:$0xff]  ;;  %v971_v46 = vmov 0  }
  0x36   :  { %859 = vmatprep.subr.bf16.mxu0 %v858_v38  ;;  %v144_v55 = vld [vmem:[%s1475_s2 + $0x368] sm:$0xff]  ;;  %v130_v57 = vld [vmem:[%s1475_s2 + $0x2f8] sm:$0xff]  ;;  %v161_v58 = vld [vmem:[%s1475_s2 + $0x3f0] sm:$0xff]  ;;  %v864_v60 = vpack.c.bf16 %v112_v52, %v111_v51  ;;  %914 = vset.pattern.permute.xlu1 %v971_v46  ;;  %p927_p3 = por %p926_p2, %p925_p1 }
  0x37   :  { %889 = vmatpush3.bf16.msra.mxu1 %v888_v37  ;;  %v162_v59 = vld [vmem:[%s1475_s2 + $0x3f8] sm:$0xff]  ;;  %v896_v61 = vpack.c.bf16 %v144_v55, %v143_v53  ;;  %v866_v62 = vpack.c.bf16 %v130_v57, %v129_v56  ;;  %v113_v63 = vld [vmem:[%s1475_s2 + $0x270] sm:$0xff]  ;;  %v31_v6 = vld [vmem:[%s1473_s0 + $0x20] sm:$0xff]  ;;  %v539_v37 = vlaneseq  ;;  %915 = vset.pattern.permute.xlu0 %v971_v46 }
  0x38   :  { %891 = vmatprep.subr.bf16.mxu1 %v890_v42  ;;  %v114_v0 = vld [vmem:[%s1475_s2 + $0x278] sm:$0xff]  ;;  %v898_v1 = vpack.c.bf16 %v162_v59, %v161_v58  ;;  %v145_v2 = vld [vmem:[%s1475_s2 + $0x370] sm:$0xff]  ;;  %v450_v8 = vld [vmem:[%s1477_s4] sm:$0xff]  ;;  %p928_p4 = pnand %p927_p3, %p921_p0 }
  0x39   :  { %861 = vmatpush3.bf16.msra.mxu0 %v860_v48  ;;  %v146_v3 = vld [vmem:[%s1475_s2 + $0x378] sm:$0xff]  ;;  %v868_v4 = vpack.c.bf16 %v114_v0, %v113_v63  ;;  %v33_v7 = vld [vmem:[%s1473_s0 + $0x30] sm:$0xff]  ;;  %v451_v9 = vld [vmem:[%s1477_s4 + $0x8] sm:$0xff]  ;;  %v1440_v38 = vand.u32 127, %v539_v37 }
  0x3a   :  { %863 = vmatprep.subr.bf16.mxu0 %v862_v50  ;;  %v900_v5 = vpack.c.bf16 %v146_v3, %v145_v2  ;;  %v903_v10 = vpack.c.bf16 %v451_v9, %v450_v8  ;;  %v452_v12 = vld [vmem:[%s1477_s4 + $0x10] sm:$0xff]  ;;  %v453_v13 = vld [vmem:[%s1477_s4 + $0x18] sm:$0xff]  ;;  %v614_v17 = vld [vmem:[%s1476_s3] ss:$0 sm:$0xff] }
  0x3b   :  { %893 = vmatpush3.bf16.msra.mxu1 %v892_v49  ;;  %v906_v14 = vpack.c.bf16 %v453_v13, %v452_v12  ;;  %v615_v33 = vld [vmem:[%s1478_s5] ss:$0 sm:$0xff] }
  0x3c   :  { %895 = vmatprep.subr.bf16.mxu1 %v894_v54  ;;  %v536_v51 = vld [vmem:[%s1474_s1] sm:$0xff] }
  0x3d   :  { %865 = vmatpush3.bf16.msra.mxu0 %v864_v60 }
  0x3e   :  { %867 = vmatprep.subr.bf16.mxu0 %v866_v62 }
  0x3f   :  { %897 = vmatpush3.bf16.msra.mxu1 %v896_v61 }
  0x40   :  { %899 = vmatprep.subr.bf16.mxu1 %v898_v1 }
  0x41   :  { %869 = vmatpush3.bf16.msra.mxu0 %v868_v4 }
  0x42   :  { %902 = vmatprep.subr.bf16.mxu0 %v968_v11 }
  0x43   :  { %901 = vmatpush3.bf16.msra.mxu1 %v900_v5 }
  0x44   :  { %375 = vmatmul.mubr.f32.vlgmr.msra.gmra.mrb[2].mxu0 %v31_v6 }
  0x45   :  { %904 = vmatpush3.bf16.msra.mxu0 %v903_v10  ;;  %771 = vmatprep.mubr.msk.f32.mxu0 %vm969_vm0, %v970_v15 }
  0x46   :  { %445 = vmatmul.mubr.f32.vlgmr.msra.gmra.mrb[2].mxu1 %v33_v7  ;;  %905 = vmatprep.subr.bf16.mxu0 %v968_v11 }
  0x49   :  { %907 = vmatpush3.bf16.msra.mxu0 %v906_v14 }
  0xf7   :  { %v650_v16 = vpop.f32.mrb[0].mxu0 }
  0xf8   :  { %v651_v18 = vpop.f32.mrb[1].mxu0 }
  0xf9   :  { %v685_v19 = vpop.f32.mrb[0].mxu1  ;;  %v652_v20 = vadd.f32 %v651_v18, %v650_v16 }
  0xfa   :  { %v686_v21 = vpop.f32.mrb[1].mxu1 }
  0xfb   :  { %v687_v22 = vadd.f32 %v686_v21, %v685_v19  ;;  %v237_v23 = vadd.f32 %v652_v20, %v614_v17 }
  0xfd   :  { %v307_v24 = vadd.f32 %v687_v22, %v237_v23 }
 0x117   :  { %v720_v25 = vpop.f32.mrb[2].mxu0 }
 0x118   :  { %v721_v26 = vpop.f32.mrb[3].mxu0 }
 0x119   :  { %v755_v27 = vpop.f32.mrb[2].mxu1  ;;  %v722_v28 = vadd.f32 %v721_v26, %v720_v25 }
 0x11a   :  { %v756_v29 = vpop.f32.mrb[3].mxu1 }
 0x11b   :  { %v757_v30 = vadd.f32 %v756_v29, %v755_v27  ;;  %v377_v31 = vadd.f32 %v722_v28, %v307_v24 }
 0x11d   :  { %v447_v32 = vadd.f32 %v757_v30, %v377_v31 }
 0x11f   :  { %772 = vmatmul.mubr.msk.f32.vlgmr.msra.gmra.mrb[4].mxu0 %vm461_vm1, %v447_v32 }
 0x1f2   :  { %v531_v34 = vpop.f32.mrb[4].mxu0 }
 0x1f3   :  { %v532_v35 = vadd.f32 %v615_v33, %v531_v34  ;;  %v773_v36 = vpop.f32.mrb[5].mxu0 }
 0x1f5   :  { %535 = vst [vmem:[#allocation2] sm:$0xff] %v532_v35  ;;  %537 = vmax.xlane.f32.xlu0 %v532_v35 }
 0x282   :  { %v538_v39 = vpop.xlane.xlu0 %537 }
 0x283   :  { %vm541_vm2 = vcmp.eq.f32.partialorder %v532_v35, %v538_v39  ;;  %v560_v40 = vsub.f32 %v532_v35, %v538_v39 }
 0x284   :  { %v542_v41 = vsel %vm541_vm2, %v1440_v38, 128 }
 0x285   :  { %v561_v42 = vmul.f32 1.442695, %v560_v40  ;;  %v544_v43 = vshra.s32 %v542_v41, 16  ;;  %v543_v47 = vand.u32 65535, %v542_v41 }
 0x287   :  { %916 = vpow2.f32 %v561_v42  ;;  %v546_v44 = vcvt.s32.f32 %v544_v43  ;;  %v545_v49 = vcvt.s32.f32 %v543_v47 }
 0x289   :  { %547 = vmin.xlane.f32.xlu0 %v546_v44 }
 0x291   :  { %v917_v45 = vpop.eup %916 }
 0x292   :  { %563 = vadd.xlane.f32.xlu0 %v917_v45 }
 0x316   :  { %v548_v48 = vpop.xlane.xlu0 %547 }
 0x317   :  { %vm549_vm3 = vcmp.eq.f32.partialorder %v546_v44, %v548_v48  ;;  %v554_v55 = vcvt.f32.s32 %v548_v48 }
 0x318   :  { %v550_v50 = vsel %vm549_vm3, %v545_v49, inf }
 0x319   :  { %551 = vmin.xlane.f32.xlu1 %v550_v50  ;;  %v555_v57 = vshll.u32 %v554_v55, 16 }
 0x32a   :  { %569 = vperm.xlu1 %914, %v536_v51  }
 0x3a6   :  { %v552_v52 = vpop.xlane.xlu1 %551 }
 0x3a7   :  { %v553_v56 = vcvt.f32.s32 %v552_v52 }
 0x3a9   :  { %v556_v58 = vadd.s32 %v555_v57, %v553_v56 }
 0x3aa   :  { %v570_v53 = vpop.permute.xlu1 %569 }
 0x3ab   :  { %vm571_vm4 = vcmp.eq.s32.totalorder %v1440_v38, %v570_v53  ;;  %vm557_vm5 = vcmp.eq.s32.totalorder %v556_v58, %v536_v51 }
 0x3ac   :  { %v572_v54 = vsel %vm571_vm4, %v532_v35, 0.0  ;;  %v617_v59 = vsel %vm557_vm5, 1.0, %v970_v15 }
 0x3ad   :  { %573 = vadd.xlane.f32.xlu0 %v572_v54 }
 0x3c3   :  { %580 = vperm.xlu0 %915, %v617_v59  }
 0x3c4   :  { %931 = shalt.err (!%p928_p4)
}
 0x3c5   :  { %s932_s10 = scalar_lea.hbm %s1479_s6, 128 }
 0x3c6   :  { %p933_p5 = scmp.ne.s32.totalorder %s1479_s6, %s932_s10  ;;  %p936_p6 = scmp.lt.u32.totalorder %s932_s10, %s1479_s6 }
 0x3c8   :  { %p938_p7 = pnand %p936_p6, %p933_p5 }
 0x3ca   :  { %941 = shalt.err (!%p938_p7)
}
 0x3cb   :  { %595 = dma.vmem_to_hbm [thread:$0]  %s593_s30, 128, %s1479_s6, [#allocation3]   ;;  %v564_v60 = vpop.xlane.xlu0 %563  ;;  %vm577_vm6 = vcmp.eq.s32.totalorder %v1440_v38, 1  ;;  %vm576_vm7 = vcmp.eq.s32.totalorder %v1440_v38, 0 }
 0x3cc   :  { %918 = vlog2.f32 %v564_v60  ;;  %s973_s17 = smov [#allocation4]  }
 0x3cd   :  { %s602_s18 = sshll.u32 %s973_s17, 4  ;;  %s603_s18 = int_to_ptr.vmem [resolvable:$true] %s602_s18 }
 0x3ce   :  { %s942_s19 = scalar_lea.vmem %s603_s18, 128  ;;  %p947_p9 = scmp.lt.s32.totalorder %s603_s18, %s603_s18 }
 0x3cf   :  { %p943_p8 = scmp.ne.s32.totalorder %s603_s18, %s942_s19  ;;  %p948_p10 = scmp.lt.s32.totalorder %s942_s19, %s942_s19 }
 0x3d1   :  { %p949_p11 = por %p948_p10, %p947_p9 }
 0x3d3   :  { %p950_p12 = pnand %p949_p11, %p943_p8 }
 0x3d6   :  { %v919_v61 = vpop.eup %918 }
 0x3d7   :  { %v566_v62 = vmul.f32 0.6931472, %v919_v61 }
 0x3d9   :  { %v567_v0 = vadd.f32 %v566_v62, %v538_v39 }
 0x43a   :  { %v574_v63 = vpop.xlane.xlu0 %573 }
 0x43b   :  { %v575_v1 = vsub.f32 %v567_v0, %v574_v63 }
 0x442   :  { %v581_v2 = vpop.permute.xlu0 %580 }
 0x443   :  { %v583_v3 = vsel %vm577_vm6, %v581_v2, 0.0 }
 0x444   :  { %v584_v4 = vsel %vm576_vm7, %v575_v1, %v583_v3 }
 0x445   :  { %585 = vst [vmem:[#allocation4] sm:$0xff] %v584_v4 }
 0x446   :  { %953 = shalt.err (!%p950_p12)
}
 0x447   :  { %s954_s2 = scalar_lea.hbm %s1480_s7, 128 }
 0x448   :  { %p955_p13 = scmp.ne.s32.totalorder %s1480_s7, %s954_s2  ;;  %p958_p0 = scmp.lt.u32.totalorder %s954_s2, %s1480_s7 }
 0x44a   :  { %p960_p1 = pnand %p958_p0, %p955_p13 }
 0x44c   :  { %963 = shalt.err (!%p960_p1)
}
 0x44d   :  { %605 = dma.vmem_to_hbm [thread:$0]  %s603_s18, 128, %s1480_s7, [#allocation5]  }
 0x44e   :  { %964 = dma.done.wait [#allocation3], 128  }
 0x44f   :  { %965 = vsyncadd [#allocation3], 4294967168 }
 0x450   :  { %966 = dma.done.wait [#allocation5], 128  }
 0x451   :  { %967 = vsyncadd [#allocation5], 4294967168 }
 0x452   :  { %612 = vsyncpa [#allocation3], 1 }
 0x453   :  { %613 = vsyncpa [#allocation5], 1 }

</bundles_post_ra>
